<compile_context>
chip_gen: v5e
topology: v5e:2x2
jax: 0.10.0
libtpu: 0.0.40
codegen_flags: <defaults>
</compile_context>

<pallas_src>
import jax
import jax.numpy as jnp
from jax.experimental import pallas as pl
from jax.experimental.pallas import tpu as pltpu

_LANES = 128


def _temp_scale_kernel(temp_ref, x_ref, out_ref):
    # temp_ref: (1, 1) f32 scalar in SMEM (the raw temperature parameter).
    # x_ref / out_ref: (tile_rows, cols) tiles in VMEM.
    inv_t = 1.0 / temp_ref[0, 0]  # one scalar divide per grid step (hoisted)
    x = x_ref[...]
    out_ref[...] = (x.astype(jnp.float32) * inv_t).astype(out_ref.dtype)


def _tile_bytes_and_vmem_limit():
    """Per-generation DMA tile target (bytes) and scoped-VMEM limit."""
    try:
        kind = jax.devices()[0].device_kind.lower()
    except Exception:
        kind = ""
    if "v7" in kind:      # ~3.2 TB/s HBM, 64 MiB VMEM/TC -> bigger tiles
        return 8 << 20, 48 << 20
    if "v5" in kind:      # v5e: ~0.82 TB/s HBM, small default scoped VMEM
        return 2 << 20, 48 << 20
    return 4 << 20, 48 << 20  # v6e and default


def _choose_tile_rows(rows, cols, itemsize, tile_bytes):
    if rows <= 8:
        return rows
    target = max(8, tile_bytes // max(1, cols * itemsize))
    target = max(8, (target // 8) * 8)
    # For big arrays keep >= 4 grid steps so the pipeline overlaps and both
    # TensorCores (v7x) get work under dimension_semantics=("parallel",).
    if rows * cols * itemsize >= (2 << 20):
        quarter = ((-(-rows // 4)) + 7) // 8 * 8
        target = min(target, quarter)
    if target >= rows:
        return rows
    return target


def temperature_scale(logits: jax.Array, temperature: jax.Array,
                      *, donate_logits: bool = False) -> jax.Array:
    """Pallas equivalent of TemperatureScaler.forward: logits / temperature."""
    orig_shape = logits.shape
    orig_dtype = logits.dtype
    # Match PyTorch type promotion against the float32 parameter.
    out_dtype = jnp.promote_types(orig_dtype, temperature.dtype)

    total = 1
    for d in orig_shape:
        total *= int(d)
    if total == 0:
        return jnp.zeros(orig_shape, out_dtype)

    # --- Free 2-D view (no pads, no copies). --------------------------------
    if total % _LANES == 0:
        # Fully lane-dense: every vector load/store uses all 128 lanes.
        x2d = logits.reshape(total // _LANES, _LANES)
    elif logits.ndim >= 2:
        # Keep the original last dim (block last dim == full array dim is
        # allowed); the ragged lane tail is handled by masked stores, cheaper
        # than an extra pad + slice pass over HBM.
        x2d = logits.reshape(-1, orig_shape[-1])
    else:
        x2d = logits.reshape(1, total)
    rows, cols = x2d.shape

    itemsize = max(jnp.dtype(orig_dtype).itemsize, jnp.dtype(out_dtype).itemsize)
    tile_bytes, vmem_limit = _tile_bytes_and_vmem_limit()
    tile_rows = _choose_tile_rows(rows, cols, itemsize, tile_bytes)
    grid = (pl.cdiv(rows, tile_rows),)

    temp2d = temperature.astype(jnp.float32).reshape(1, 1)

    # Optional in-place write (only valid when dtypes match).
    io_aliases = {1: 0} if (donate_logits and out_dtype == orig_dtype) else {}

    out2d = pl.pallas_call(
        _temp_scale_kernel,
        out_shape=jax.ShapeDtypeStruct((rows, cols), out_dtype),
        grid_spec=pl.GridSpec(
            grid=grid,
            in_specs=[
                # temperature scalar in SMEM (same tiny block every step)
                pl.BlockSpec((1, 1), lambda i: (0, 0), memory_space=pltpu.SMEM),
                # row tiles, double-buffered by the Pallas pipeline
                pl.BlockSpec((tile_rows, cols), lambda i: (i, 0)),
            ],
            out_specs=pl.BlockSpec((tile_rows, cols), lambda i: (i, 0)),
        ),
        compiler_params=pltpu.CompilerParams(
            dimension_semantics=("parallel",),
            vmem_limit_bytes=vmem_limit,
        ),
        input_output_aliases=io_aliases,
    )(temp2d, x2d)

    return out2d.reshape(orig_shape)


# TODO(synk): set_temperature (LBFGS optimization of the temperature) is a
# host-side training loop, not a kernel; only the forward pass is implemented.


if __name__ == "__main__":
    key = jax.random.PRNGKey(0)
    k1, k2, k3, k4 = jax.random.split(key, 4)

    # nn.Parameter(torch.ones(1) * 1.0) analogue, with a non-trivial value.
    temperature = jnp.ones((1,), dtype=jnp.float32) * 1.5

    # 1) Lane-aligned small case: batch=8, num_classes=32 (total % 128 == 0).
    logits = jax.random.normal(k1, (8, 32), dtype=jnp.float32)
    out = jax.block_until_ready(temperature_scale(logits, temperature))
    ref = logits / temperature[0]
    assert out.shape == ref.shape and out.dtype == ref.dtype
    assert jnp.allclose(out, ref, atol=1e-6, rtol=1e-6), "mismatch (aligned)"

    # 2) Misaligned small case: (7, 50) — no wrapper padding, masked lane tail.
    logits2 = jax.random.normal(k2, (7, 50), dtype=jnp.float32)
    out2 = jax.block_until_ready(temperature_scale(logits2, temperature))
    ref2 = logits2 / temperature[0]
    assert jnp.allclose(out2, ref2, atol=1e-6, rtol=1e-6), "mismatch (misaligned)"

    # 3) bf16 logits promote to f32 (matches PyTorch promotion vs f32 param).
    logits3 = jax.random.normal(k3, (4, 96), dtype=jnp.bfloat16)
    out3 = jax.block_until_ready(temperature_scale(logits3, temperature))
    ref3 = (logits3 / temperature[0]).astype(jnp.float32)
    assert out3.dtype == jnp.float32
    assert jnp.allclose(out3, ref3, atol=1e-5, rtol=1e-5), "mismatch (bf16)"

    # 4) Moderate misaligned case exercising a multi-step grid with a ragged
    #    edge tile (still only ~2.5 MB).
    logits4 = jax.random.normal(k4, (2100, 300), dtype=jnp.float32)
    out4 = jax.block_until_ready(temperature_scale(logits4, temperature))
    ref4 = logits4 / temperature[0]
    assert jnp.allclose(out4, ref4, atol=1e-6, rtol=1e-6), "mismatch (multi-step)"

    print("KERNEL_OK")
</pallas_src>

<mosaic_0001>
module attributes {stable_mosaic.version = 11 : i64} {
  func.func @_temp_scale_kernel(%arg0: i32, %arg1: memref<1x1xf32, #tpu.memory_space<smem>>, %arg2: memref<2x128xf32, #tpu.memory_space<vmem>>, %arg3: memref<2x128xf32, #tpu.memory_space<vmem>>) attributes {dimension_semantics = [#tpu.dimension_semantics<parallel>], iteration_bounds = array<i64: 1>, scalar_prefetch = 0 : i64, scratch_operands = 0 : i64, tpu.core_type = #tpu.core_type<tc>, window_params = [{transform_indices = @transform_0, window_bounds = array<i64: 1, 1>}, {transform_indices = @transform_1, window_bounds = array<i64: 2, 128>}, {transform_indices = @transform_2, window_bounds = array<i64: 2, 128>}]} {
    %c0 = arith.constant 0 : index
    %c0_0 = arith.constant 0 : index
    %0 = memref.load %arg1[%c0, %c0_0] : memref<1x1xf32, #tpu.memory_space<smem>>
    %cst = arith.constant 1.000000e+00 : f32
    %1 = arith.divf %cst, %0 : f32
    %c0_1 = arith.constant 0 : index
    %c0_2 = arith.constant 0 : index
    %2 = vector.load %arg2[%c0_1, %c0_2] : memref<2x128xf32, #tpu.memory_space<vmem>>, vector<2x128xf32>
    %3 = vector.broadcast %1 : f32 to vector<2x128xf32>
    %4 = arith.mulf %2, %3 : vector<2x128xf32>
    %c0_3 = arith.constant 0 : index
    %c0_4 = arith.constant 0 : index
    %5 = vector.load %arg3[%c0_3, %c0_4] : memref<2x128xf32, #tpu.memory_space<vmem>>, vector<2x128xf32>
    tpu.vector_store %arg3[%c0_3, %c0_4], %4 {strides = array<i32>} : memref<2x128xf32, #tpu.memory_space<vmem>>, vector<2x128xf32>,
    return
  }
  func.func @transform_0(%arg0: i32) -> (i32, i32) {
    %c0_i32 = arith.constant 0 : i32
    %c0_i32_0 = arith.constant 0 : i32
    %c0_i32_1 = arith.constant 0 : i32
    return %c0_i32, %c0_i32_0 : i32, i32
  }
  func.func @transform_1(%arg0: i32) -> (i32, i32) {
    %c0_i32 = arith.constant 0 : i32
    %c0_i32_0 = arith.constant 0 : i32
    return %arg0, %c0_i32 : i32, i32
  }
  func.func @transform_2(%arg0: i32) -> (i32, i32) {
    %c0_i32 = arith.constant 0 : i32
    %c0_i32_0 = arith.constant 0 : i32
    return %arg0, %c0_i32 : i32, i32
  }
}

</mosaic_0001>

<bundles_post_ra>
// kernel: tpu_custom_call.1
= control target key start
LH: loop header
LB: loop body
LE: loop exit
PB: predicated region body
PF: predicated region fallthrough
CT: control target
= control target key end

     0   :  { %s106_s0 = inlined_call_operand.<no memory space> [shape: f32[1,1], index: 0, kind: input, shape index: {}]   ;;  %s107_s1 = inlined_call_operand.vmem [shape: f32[2,128], index: 1, kind: input, shape index: {}]   ;;  %s108_s2 = inlined_call_operand.hbm [shape: f32[2,128], index: 2, kind: output, shape index: {}]  }
   0x1   :  { %v14_v0 = vstv %s106_s0 }
   0x2   :  { %8 = vsyncpa [#allocation4], 0  ;;  %53 = vrcp.f32 %v14_v0  ;;  %v26_v3 = vand.u32 2147483648, %v14_v0  ;;  %vm20_vm0 = vweird.f32 %v14_v0  ;;  %v24_v5 = vand.u32 2147483647, %v14_v0  ;;  %s81_s0 = smov [#allocation3]  }
   0x3   :  { %v30_v11 = vld [vmem:[%s107_s1] sm:$0x3]  ;;  %s39_s13 = sshll.u32 %s81_s0, 4  ;;  %s41_s16 = sshll.u32 %s108_s2, 4  ;;  %s40_s13 = int_to_ptr.vmem [resolvable:$true] %s39_s13  ;;  %s42_s16 = int_to_ptr.hbm [resolvable:$true] %s41_s16 }
   0x4   :  { %v27_v7 = vor.u32 1.1754944e-38, %v26_v3  ;;  %vm25_vm3 = vcmp.eq.f32.partialorder %v24_v5, 8.507059e+37 }
   0x8   :  { %v54_v1 = vpop.eup %53 }
   0x9   :  { %v16_v2 = vmul.f32 %v54_v1, %v14_v0  ;;  %vm21_vm1 = vweird.f32 %v54_v1 }
   0xa   :  { %vm22_vm2 = vmor %vm20_vm0, %vm21_vm1 }
   0xb   :  { %v17_v4 = vsub.f32 1.0, %v16_v2 }
   0xd   :  { %v18_v6 = vmul.f32 %v54_v1, %v17_v4 }
   0xf   :  { %v19_v8 = vadd.f32 %v54_v1, %v18_v6 }
  0x11   :  { %v23_v9 = vsel %vm22_vm2, %v54_v1, %v19_v8 }
  0x12   :  { %v28_v10 = vsel %vm25_vm3, %v27_v7, %v23_v9 }
  0x13   :  { %50 = vpush %v28_v10 }
  0x44   :  { %s51_s17 = spop %50 }
  0x45   :  { %v31_v12 = vstv %s51_s17 }
  0x46   :  { %v32_v13 = vmul.f32 %v31_v12, %v30_v11 }
  0x48   :  { %33 = vst [vmem:[#allocation3] sm:$0x3] %v32_v13 }
  0x49   :  { %44 = dma.vmem_to_hbm [thread:$0]  %s40_s13, 32, %s42_s16, [#allocation4]  }
  0x4a   :  { %79 = dma.done.wait [#allocation4], 32  }
  0x4b   :  { %80 = vsyncadd [#allocation4], 4294967264 }
  0x4c   :  { %49 = vsyncpa [#allocation4], 1 }

</bundles_post_ra>
